<compile_context>
chip_gen: v7x
topology: tpu7x:2x2x1
jax: 0.10.0
libtpu: 0.0.40
codegen_flags: <defaults>
</compile_context>

<pallas_src>
import jax
import jax.numpy as jnp
from jax.experimental import pallas as pl
from jax.experimental.pallas import tpu as pltpu


HIDDEN = 32
HIDDEN_PAD = 128          # zero-padded hidden width (full 128 lanes)
IN_FEATURES = 16
OUT_FEATURES = 4
TM_TARGET = 8192          # target rows per grid step (amortizes ~0.35 us/step)


def dqn_kernel(x_ref, w1_ref, b1_ref, w2_ref, b2_ref, o_ref):
    # fc1: (TM,16)f32 @ (16,128)f32 -> f32, bias + ReLU in f32 (full-lane VPU work)
    h = jnp.dot(x_ref[...], w1_ref[...], preferred_element_type=jnp.float32)
    h = jnp.maximum(h + b1_ref[...], 0.0)
    # out: (TM,128)f32 @ (128,4)f32 -> f32 (padded hidden rows of w2 are zero)
    y = jnp.dot(h, w2_ref[...], preferred_element_type=jnp.float32)
    o_ref[...] = (y + b2_ref[...]).astype(o_ref.dtype)


def _round_up(n, m):
    return ((n + m - 1) // m) * m


def dqn_forward(x, w1, b1, w2, b2):
    """x: (B, ...) flattened to (B, 16). Returns (B, 4) f32 Q-values.

    w1: (16, 32), b1: (32,), w2: (32, 4), b2: (4,)  (weights are PyTorch W.T)
    """
    B = x.shape[0]
    x2d = x.reshape(B, -1).astype(jnp.float32)
    assert x2d.shape[1] == IN_FEATURES, "DQN expects 16 input features"

    # --- Tiling: pad B only to a multiple of 8, pick steps >= 2 (v7x megacore)
    # and TM = Bp/steps so the grid divides exactly (minimal pad/slice waste).
    Bp = _round_up(B, 8)
    steps = max(2, pl.cdiv(Bp, TM_TARGET)) if Bp >= 16 else 1
    TM = _round_up(pl.cdiv(Bp, steps), 8)
    Bp = steps * TM
    if Bp != B:
        x2d = jnp.pad(x2d, ((0, Bp - B), (0, 0)))

    # --- Parameters: zero-pad hidden 32 -> 128 (full-lane MXU/VPU, free in VMEM).
    f32 = jnp.float32
    w1p = jnp.zeros((IN_FEATURES, HIDDEN_PAD), f32).at[:, :HIDDEN].set(w1.astype(f32))
    b1p = jnp.zeros((1, HIDDEN_PAD), f32).at[:, :HIDDEN].set(b1.astype(f32))
    w2p = jnp.zeros((HIDDEN_PAD, OUT_FEATURES), f32).at[:HIDDEN, :].set(w2.astype(f32))
    b2p = b2.reshape(1, OUT_FEATURES).astype(f32)

    cost = pl.CostEstimate(
        flops=2 * Bp * (IN_FEATURES * HIDDEN_PAD + HIDDEN_PAD * OUT_FEATURES),
        transcendentals=0,
        bytes_accessed=(Bp * (IN_FEATURES * 4 + OUT_FEATURES * 4)   # x f32 in, y f32 out
                        + 4 * (IN_FEATURES * HIDDEN_PAD + HIDDEN_PAD
                               + HIDDEN_PAD * OUT_FEATURES + OUT_FEATURES)),
    )

    out_p = pl.pallas_call(
        dqn_kernel,
        out_shape=jax.ShapeDtypeStruct((Bp, OUT_FEATURES), jnp.float32),
        grid_spec=pltpu.PrefetchScalarGridSpec(
            num_scalar_prefetch=0,
            grid=(steps,),
            in_specs=[
                pl.BlockSpec((TM, IN_FEATURES), lambda i: (i, 0)),        # x tile
                pl.BlockSpec((IN_FEATURES, HIDDEN_PAD), lambda i: (0, 0)),  # w1 (resident)
                pl.BlockSpec((1, HIDDEN_PAD), lambda i: (0, 0)),            # b1 (resident)
                pl.BlockSpec((HIDDEN_PAD, OUT_FEATURES), lambda i: (0, 0)), # w2 (resident)
                pl.BlockSpec((1, OUT_FEATURES), lambda i: (0, 0)),          # b2 (resident)
            ],
            out_specs=pl.BlockSpec((TM, OUT_FEATURES), lambda i: (i, 0)),
        ),
        compiler_params=pltpu.CompilerParams(
            dimension_semantics=("parallel",),
            vmem_limit_bytes=48 << 20,   # <= v7x's 64 MiB physical; fine on v5e/v6e
        ),
        cost_estimate=cost,
    )(x2d, w1p, b1p, w2p, b2p)

    return out_p[:B] if Bp != B else out_p


def init_params(key):
    """Deterministic init mirroring PyTorch nn.Linear default U(-1/sqrt(fan_in), +)."""
    k1, k2, k3, k4 = jax.random.split(key, 4)
    bound1 = 1.0 / jnp.sqrt(16.0)
    bound2 = 1.0 / jnp.sqrt(32.0)
    # stored as (in, out) == PyTorch weight.T
    w1 = jax.random.uniform(k1, (16, 32), jnp.float32, -bound1, bound1)
    b1 = jax.random.uniform(k2, (32,), jnp.float32, -bound1, bound1)
    w2 = jax.random.uniform(k3, (32, 4), jnp.float32, -bound2, bound2)
    b2 = jax.random.uniform(k4, (4,), jnp.float32, -bound2, bound2)
    return w1, b1, w2, b2


def _reference(x, w1, b1, w2, b2):
    """Pure-JAX f32 reference matching the PyTorch forward."""
    x2d = x.reshape(x.shape[0], -1).astype(jnp.float32)
    h = jnp.maximum(x2d @ w1 + b1, 0.0)
    return h @ w2 + b2


if __name__ == "__main__":
    key = jax.random.PRNGKey(0)
    kx, kx2, kp = jax.random.split(key, 3)
    w1, b1, w2, b2 = init_params(kp)

    # Small batch, already-flat 16-feature inputs (single-step grid path).
    B = 8
    x = jax.random.normal(kx, (B, 16), jnp.float32)
    out = jax.block_until_ready(dqn_forward(x, w1, b1, w2, b2))
    ref = _reference(x, w1, b1, w2, b2)
    assert out.shape == (B, 4)
    assert jnp.allclose(out, ref, atol=1e-3, rtol=1e-3)

    # Non-multiple-of-8 batch with 4x4 "board" input: exercises flatten,
    # the padding path, and the 2-step (megacore-friendly) grid.
    B2 = 10
    x2 = jax.random.normal(kx2, (B2, 4, 4), jnp.float32)
    out2 = jax.block_until_ready(dqn_forward(x2, w1, b1, w2, b2))
    ref2 = _reference(x2, w1, b1, w2, b2)
    assert out2.shape == (B2, 4)
    assert jnp.allclose(out2, ref2, atol=1e-3, rtol=1e-3)

    print("KERNEL_OK")
</pallas_src>

<mosaic_0001>
module attributes {stable_mosaic.version = 11 : i64} {
  func.func @dqn_kernel(%arg0: i32, %arg1: memref<8x16xf32, #tpu.memory_space<vmem>>, %arg2: memref<16x128xf32, #tpu.memory_space<vmem>>, %arg3: memref<1x128xf32, #tpu.memory_space<vmem>>, %arg4: memref<128x4xf32, #tpu.memory_space<vmem>>, %arg5: memref<1x4xf32, #tpu.memory_space<vmem>>, %arg6: memref<8x4xf32, #tpu.memory_space<vmem>>) attributes {dimension_semantics = [#tpu.dimension_semantics<parallel>], iteration_bounds = array<i64: 1>, scalar_prefetch = 0 : i64, scratch_operands = 0 : i64, tpu.core_type = #tpu.core_type<tc>, window_params = [{transform_indices = @transform_0, window_bounds = array<i64: 8, 16>}, {pipeline_mode = #tpu.pipeline_mode<synchronous>, transform_indices = @transform_1, window_bounds = array<i64: 16, 128>}, {pipeline_mode = #tpu.pipeline_mode<synchronous>, transform_indices = @transform_2, window_bounds = array<i64: 1, 128>}, {pipeline_mode = #tpu.pipeline_mode<synchronous>, transform_indices = @transform_3, window_bounds = array<i64: 128, 4>}, {pipeline_mode = #tpu.pipeline_mode<synchronous>, transform_indices = @transform_4, window_bounds = array<i64: 1, 4>}, {transform_indices = @transform_5, window_bounds = array<i64: 8, 4>}]} {
    %c0 = arith.constant 0 : index
    %c0_0 = arith.constant 0 : index
    %0 = vector.load %arg1[%c0, %c0_0] : memref<8x16xf32, #tpu.memory_space<vmem>>, vector<8x16xf32>
    %c0_1 = arith.constant 0 : index
    %c0_2 = arith.constant 0 : index
    %1 = vector.load %arg2[%c0_1, %c0_2] : memref<16x128xf32, #tpu.memory_space<vmem>>, vector<16x128xf32>
    %cst = arith.constant dense<0.000000e+00> : vector<8x128xf32>
    %2 = tpu.matmul %0, %1, %cst {dimension_numbers = #tpu.dot_dimension_numbers<[1], [0], [0], [1], [0, 0, 1, 1], [], []>} : vector<8x16xf32>, vector<16x128xf32>, vector<8x128xf32> -> vector<8x128xf32>
    %c0_3 = arith.constant 0 : index
    %c0_4 = arith.constant 0 : index
    %3 = vector.load %arg3[%c0_3, %c0_4] : memref<1x128xf32, #tpu.memory_space<vmem>>, vector<1x128xf32>
    %4 = vector.broadcast %3 : vector<1x128xf32> to vector<8x128xf32>
    %5 = arith.addf %2, %4 : vector<8x128xf32>
    %cst_5 = arith.constant 0.000000e+00 : f32
    %6 = vector.broadcast %cst_5 : f32 to vector<8x128xf32>
    %7 = arith.maximumf %5, %6 : vector<8x128xf32>
    %c0_6 = arith.constant 0 : index
    %c0_7 = arith.constant 0 : index
    %8 = vector.load %arg4[%c0_6, %c0_7] : memref<128x4xf32, #tpu.memory_space<vmem>>, vector<128x4xf32>
    %cst_8 = arith.constant dense<0.000000e+00> : vector<8x4xf32>
    %9 = tpu.matmul %7, %8, %cst_8 {dimension_numbers = #tpu.dot_dimension_numbers<[1], [0], [0], [1], [0, 0, 1, 1], [], []>} : vector<8x128xf32>, vector<128x4xf32>, vector<8x4xf32> -> vector<8x4xf32>
    %c0_9 = arith.constant 0 : index
    %c0_10 = arith.constant 0 : index
    %10 = vector.load %arg5[%c0_9, %c0_10] : memref<1x4xf32, #tpu.memory_space<vmem>>, vector<1x4xf32>
    %11 = vector.broadcast %10 : vector<1x4xf32> to vector<8x4xf32>
    %12 = arith.addf %9, %11 : vector<8x4xf32>
    %c0_11 = arith.constant 0 : index
    %c0_12 = arith.constant 0 : index
    %13 = vector.load %arg6[%c0_11, %c0_12] : memref<8x4xf32, #tpu.memory_space<vmem>>, vector<8x4xf32>
    tpu.vector_store %arg6[%c0_11, %c0_12], %12 {strides = array<i32>} : memref<8x4xf32, #tpu.memory_space<vmem>>, vector<8x4xf32>,
    return
  }
  func.func @transform_0(%arg0: i32) -> (i32, i32) {
    %c0_i32 = arith.constant 0 : i32
    %c0_i32_0 = arith.constant 0 : i32
    return %arg0, %c0_i32 : i32, i32
  }
  func.func @transform_1(%arg0: i32) -> (i32, i32) {
    %c0_i32 = arith.constant 0 : i32
    %c0_i32_0 = arith.constant 0 : i32
    %c0_i32_1 = arith.constant 0 : i32
    return %c0_i32, %c0_i32_0 : i32, i32
  }
  func.func @transform_2(%arg0: i32) -> (i32, i32) {
    %c0_i32 = arith.constant 0 : i32
    %c0_i32_0 = arith.constant 0 : i32
    %c0_i32_1 = arith.constant 0 : i32
    return %c0_i32, %c0_i32_0 : i32, i32
  }
  func.func @transform_3(%arg0: i32) -> (i32, i32) {
    %c0_i32 = arith.constant 0 : i32
    %c0_i32_0 = arith.constant 0 : i32
    %c0_i32_1 = arith.constant 0 : i32
    return %c0_i32, %c0_i32_0 : i32, i32
  }
  func.func @transform_4(%arg0: i32) -> (i32, i32) {
    %c0_i32 = arith.constant 0 : i32
    %c0_i32_0 = arith.constant 0 : i32
    %c0_i32_1 = arith.constant 0 : i32
    return %c0_i32, %c0_i32_0 : i32, i32
  }
  func.func @transform_5(%arg0: i32) -> (i32, i32) {
    %c0_i32 = arith.constant 0 : i32
    %c0_i32_0 = arith.constant 0 : i32
    return %arg0, %c0_i32 : i32, i32
  }
}

</mosaic_0001>

<bundles_post_ra>
// kernel: tpu_custom_call.1
= control target key start
LH: loop header
LB: loop body
LE: loop exit
PB: predicated region body
PF: predicated region fallthrough
CT: control target
= control target key end

     0   :  { %v299_v0 = vmov 0.0|0.0   ;;  %vm300_vm0 = vmmov 0   ;;  %v301_v3 = vmov 0.0   ;;  %vm30_vm1 = vcmask 130048   ;;  %s398_s1 = inlined_call_operand.vmem [shape: f32[16,128], index: 1, kind: input, shape index: {}]   ;;  %s399_s3 = inlined_call_operand.vmem [shape: f32[128,4], index: 3, kind: input, shape index: {}]   ;;  %s400_s0 = inlined_call_operand.vmem [shape: f32[8,16], index: 0, kind: input, shape index: {}]   ;;  %s401_s2 = inlined_call_operand.vmem [shape: f32[1,128], index: 2, kind: input, shape index: {}]   ;;  %s402_s4 = inlined_call_operand.vmem [shape: f32[1,4], index: 4, kind: input, shape index: {}]   ;;  %s403_s5 = inlined_call_operand.vmem [shape: f32[8,4], index: 5, kind: output, shape index: {}]  }
   0x1   :  { %269 = vmatprep.subr.bf16.mxu0 %v299_v0  ;;  %v21_v1 = vld [vmem:[%s398_s1] sm:$0xff]  ;;  %v22_v2 = vld [vmem:[%s398_s1 + $0x8] sm:$0xff]  ;;  %231 = vmatprep.mubr.msk.f32.mxu0 %vm300_vm0, %v301_v3  ;;  %v107_v7 = vld [vmem:[%s399_s3 + $0x10] sm:$0xff]  ;;  %vm198_vm2 = vcmask 31744  }
   0x2   :  { %v270_v4 = vpack.c.bf16 %v22_v2, %v21_v1  ;;  %272 = vmatprep.subr.bf16.mxu1 %v299_v0  ;;  %v105_v5 = vld [vmem:[%s399_s3] sm:$0xff]  ;;  %v106_v6 = vld [vmem:[%s399_s3 + $0x8] sm:$0xff]  ;;  %266 = vmatprep.mubr.msk.f32.mxu1 %vm300_vm0, %v301_v3  ;;  %v108_v9 = vld [vmem:[%s399_s3 + $0x18] sm:$0xff] }
   0x3   :  { %v273_v8 = vpack.c.bf16 %v106_v6, %v105_v5  ;;  %v20_v10 = vld [vmem:[%s400_s0] sm:$0xff]  ;;  %v276_v11 = vpack.c.bf16 %v108_v9, %v107_v7  ;;  %v110_v13 = vld [vmem:[%s399_s3 + $0x28] sm:$0xff]  ;;  %v111_v15 = vld [vmem:[%s399_s3 + $0x30] sm:$0xff] }
   0x4   :  { %271 = vmatpush3.bf16.msra.mxu0 %v270_v4  ;;  %v109_v12 = vld [vmem:[%s399_s3 + $0x20] sm:$0xff]  ;;  %v112_v16 = vld [vmem:[%s399_s3 + $0x38] sm:$0xff]  ;;  %v114_v19 = vld [vmem:[%s399_s3 + $0x48] sm:$0xff] }
   0x5   :  { %274 = vmatpush3.bf16.msra.mxu1 %v273_v8  ;;  %v279_v14 = vpack.c.bf16 %v110_v13, %v109_v12  ;;  %v282_v17 = vpack.c.bf16 %v112_v16, %v111_v15  ;;  %v113_v18 = vld [vmem:[%s399_s3 + $0x40] sm:$0xff]  ;;  %v115_v21 = vld [vmem:[%s399_s3 + $0x50] sm:$0xff]  ;;  %v116_v22 = vld [vmem:[%s399_s3 + $0x58] sm:$0xff] }
   0x6   :  { %275 = vmatprep.subr.bf16.mxu1 %v299_v0  ;;  %v285_v20 = vpack.c.bf16 %v114_v19, %v113_v18  ;;  %v288_v23 = vpack.c.bf16 %v116_v22, %v115_v21  ;;  %v117_v24 = vld [vmem:[%s399_s3 + $0x60] sm:$0xff]  ;;  %v118_v25 = vld [vmem:[%s399_s3 + $0x68] sm:$0xff]  ;;  %v119_v27 = vld [vmem:[%s399_s3 + $0x70] sm:$0xff] }
   0x7   :  { %232 = vmatmul.mubr.msk.f32.vlgmr.msra.gmra.mrb[0].mxu0 %vm30_vm1, %v20_v10  ;;  %v291_v26 = vpack.c.bf16 %v118_v25, %v117_v24  ;;  %v120_v28 = vld [vmem:[%s399_s3 + $0x78] sm:$0xff]  ;;  %v204_v30 = vld [vmem:[%s401_s2] ss:$0 sm:$0xff] }
   0x8   :  { %v294_v29 = vpack.c.bf16 %v120_v28, %v119_v27  ;;  %v206_v35 = vld [vmem:[%s402_s4] ss:$0 sm:$0xff] }
   0x9   :  { %277 = vmatpush3.bf16.msra.mxu1 %v276_v11 }
   0xa   :  { %278 = vmatprep.subr.bf16.mxu1 %v299_v0 }
   0xd   :  { %280 = vmatpush3.bf16.msra.mxu1 %v279_v14 }
   0xe   :  { %281 = vmatprep.subr.bf16.mxu1 %v299_v0 }
  0x11   :  { %283 = vmatpush3.bf16.msra.mxu1 %v282_v17 }
  0x12   :  { %284 = vmatprep.subr.bf16.mxu1 %v299_v0 }
  0x15   :  { %286 = vmatpush3.bf16.msra.mxu1 %v285_v20 }
  0x16   :  { %287 = vmatprep.subr.bf16.mxu1 %v299_v0 }
  0x19   :  { %289 = vmatpush3.bf16.msra.mxu1 %v288_v23 }
  0x1a   :  { %290 = vmatprep.subr.bf16.mxu1 %v299_v0 }
  0x1d   :  { %292 = vmatpush3.bf16.msra.mxu1 %v291_v26 }
  0x1e   :  { %293 = vmatprep.subr.bf16.mxu1 %v299_v0 }
  0x21   :  { %295 = vmatpush3.bf16.msra.mxu1 %v294_v29 }
  0xda   :  { %v100_v31 = vpop.f32.mrb[0].mxu0 }
  0xdb   :  { %v101_v32 = vadd.f32 %v204_v30, %v100_v31  ;;  %v233_v33 = vpop.f32.mrb[1].mxu0 }
  0xdd   :  { %v104_v34 = vmax.f32 %v101_v32, 0.0 }
  0xdf   :  { %267 = vmatmul.mubr.f32.vlgmr.msra.gmra.mrb[0].mxu1 %v104_v34 }
 0x1b2   :  { %v194_v36 = vpop.f32.mrb[0].mxu1 }
 0x1b3   :  { %v195_v37 = vadd.f32 %v206_v35, %v194_v36  ;;  %v268_v38 = vpop.f32.mrb[1].mxu1 }
 0x1b5   :  { %199 = vst.msk [vmem:[%s403_s5] sm:$0xff] %vm198_vm2, %v195_v37 }

</bundles_post_ra>
